<compile_context>
chip_gen: v7x
topology: tpu7x:2x2x1
jax: 0.10.0
libtpu: 0.0.40
codegen_flags: <defaults>
</compile_context>

<pallas_src>
import jax
import jax.numpy as jnp
from jax.experimental import pallas as pl
from jax.experimental.pallas import tpu as pltpu


def msm_kernel(x_ref, w_ref, b_ref, out_ref, xp_ref):
    # x_ref : (1, C, H, W)   NCHW input block (one batch element)
    # w_ref : (C*9,)  SMEM   combined conv weights, index = c*9 + kh*3 + kw
    #                        (the 1x1 weight is already folded into the centre tap)
    # b_ref : (1,)    SMEM   combined bias (b1x1 + b3x3)
    # out_ref: (1, H, W)
    # xp_ref : (C, H+2, W+2) VMEM scratch -- zero-padded halo buffer
    _, C, H, W = x_ref.shape

    # Build the zero-padded slab.  Zeroing the whole scratch every grid step
    # keeps the halo correct regardless of how the grid is sharded across
    # TensorCores (megacore); it is one cheap VMEM write pass vs. the nine
    # read passes of the tap loop below.
    xp_ref[...] = jnp.zeros_like(xp_ref)
    xp_ref[:, 1:1 + H, 1:1 + W] = x_ref[0]

    # 9-tap, C-channel contraction as broadcast-scalar FMAs on the VPU.
    # Only one shifted (H, W) tap is live at a time (sliced from the ref).
    acc = jnp.full((H, W), b_ref[0], dtype=jnp.float32)
    for c in range(C):                      # dim is small for this module; full unroll
        base = c * 9
        for kh in range(3):
            for kw in range(3):
                tap = xp_ref[c, kh:kh + H, kw:kw + W]            # (H, W)
                acc = acc + w_ref[base + kh * 3 + kw] * tap

    # NOTE: for toy W (< 128) this store is lane-masked; for real workloads keep
    # W (or a flattened H*W slab) a multiple of 128 for unmasked lane-dense stores.
    out_ref[0] = acc.astype(out_ref.dtype)


def msm_forward(x_nchw, w1x1, b1x1, w3x3, b3x3):
    """x_nchw: (N, C, H, W) f32; w1x1: (1, C, 1, 1); w3x3: (1, C, 3, 3); biases: (1,)."""
    N, C, H, W = x_nchw.shape

    # Fold the 1x1 conv into the 3x3 centre tap and combine the biases.
    w3 = w3x3.reshape(C, 3, 3).astype(jnp.float32)               # [c, kh, kw]
    w1 = w1x1.reshape(C).astype(jnp.float32)
    w_comb = w3.at[:, 1, 1].add(w1)                              # (C, 3, 3)
    w_flat = w_comb.reshape(C * 9)                               # idx = c*9 + kh*3 + kw
    b_comb = (b1x1 + b3x3).reshape(1).astype(jnp.float32)

    # NOTE: for large H/W (especially on v7x's 64 MiB VMEM) add spatial row-block
    # tiling with a 2-row halo instead of a whole-image block per batch element;
    # at these sizes one (1, C, H, W) block per step fits easily and grid=(N,)
    # already gives both v7x cores independent work.
    out = pl.pallas_call(
        msm_kernel,
        out_shape=jax.ShapeDtypeStruct((N, H, W), jnp.float32),
        grid=(N,),
        in_specs=[
            pl.BlockSpec((1, C, H, W), lambda n: (n, 0, 0, 0)),
            pl.BlockSpec(memory_space=pltpu.MemorySpace.SMEM),   # weights, resident
            pl.BlockSpec(memory_space=pltpu.MemorySpace.SMEM),   # bias, resident
        ],
        out_specs=pl.BlockSpec((1, H, W), lambda n: (n, 0, 0)),
        scratch_shapes=[pltpu.VMEM((C, H + 2, W + 2), jnp.float32)],
        compiler_params=pltpu.CompilerParams(
            dimension_semantics=("parallel",),
            vmem_limit_bytes=32 * 1024 * 1024),
    )(x_nchw, w_flat, b_comb)

    return out.reshape(N, 1, H, W)


def msm_reference(x_nchw, w1x1, b1x1, w3x3, b3x3):
    dn = ("NCHW", "OIHW", "NCHW")
    x1 = jax.lax.conv_general_dilated(x_nchw, w1x1, (1, 1), "VALID",
                                      dimension_numbers=dn) + b1x1.reshape(1, 1, 1, 1)
    x2 = jax.lax.conv_general_dilated(x_nchw, w3x3, (1, 1), ((1, 1), (1, 1)),
                                      dimension_numbers=dn) + b3x3.reshape(1, 1, 1, 1)
    return x2 + x1


if __name__ == "__main__":
    key = jax.random.PRNGKey(0)
    k_x, k_w1, k_b1, k_w3, k_b3 = jax.random.split(key, 5)

    N, dim, H, W = 2, 4, 16, 16
    x = jax.random.normal(k_x, (N, dim, H, W), dtype=jnp.float32)

    # Deterministic "parameters" matching nn.Conv2d(dim,1,1) and nn.Conv2d(dim,1,3,padding=1)
    w1x1 = jax.random.normal(k_w1, (1, dim, 1, 1), dtype=jnp.float32) * 0.1
    b1x1 = jax.random.normal(k_b1, (1,), dtype=jnp.float32) * 0.1
    w3x3 = jax.random.normal(k_w3, (1, dim, 3, 3), dtype=jnp.float32) * 0.1
    b3x3 = jax.random.normal(k_b3, (1,), dtype=jnp.float32) * 0.1

    out = msm_forward(x, w1x1, b1x1, w3x3, b3x3)
    out = jax.block_until_ready(out)

    ref = msm_reference(x, w1x1, b1x1, w3x3, b3x3)
    assert out.shape == (N, 1, H, W), out.shape
    assert jnp.allclose(out, ref, atol=1e-4, rtol=1e-4), float(jnp.max(jnp.abs(out - ref)))

    print("KERNEL_OK")
</pallas_src>

<mosaic_0001>
module attributes {stable_mosaic.version = 11 : i64} {
  func.func @msm_kernel(%arg0: i32, %arg1: memref<1x4x16x16xf32, #tpu.memory_space<vmem>>, %arg2: memref<36xf32, #tpu.memory_space<smem>>, %arg3: memref<1xf32, #tpu.memory_space<smem>>, %arg4: memref<1x16x16xf32, #tpu.memory_space<vmem>>, %arg5: memref<4x18x18xf32, #tpu.memory_space<vmem>>) attributes {dimension_semantics = [#tpu.dimension_semantics<parallel>], iteration_bounds = array<i64: 2>, scalar_prefetch = 0 : i64, scratch_operands = 1 : i64, tpu.core_type = #tpu.core_type<tc>, window_params = [{transform_indices = @transform_0, window_bounds = array<i64: 1, 4, 16, 16>}, {transform_indices = @transform_1, window_bounds = array<i64: 36>}, {transform_indices = @transform_2, window_bounds = array<i64: 1>}, {transform_indices = @transform_3, window_bounds = array<i64: 1, 16, 16>}]} {
    %cst = arith.constant 0.000000e+00 : f32
    %0 = vector.broadcast %cst : f32 to vector<4x18x18xf32>
    %c0 = arith.constant 0 : index
    %c0_0 = arith.constant 0 : index
    %c0_1 = arith.constant 0 : index
    %1 = vector.load %arg5[%c0, %c0_0, %c0_1] : memref<4x18x18xf32, #tpu.memory_space<vmem>>, vector<4x18x18xf32>
    tpu.vector_store %arg5[%c0, %c0_0, %c0_1], %0 {strides = array<i32>} : memref<4x18x18xf32, #tpu.memory_space<vmem>>, vector<4x18x18xf32>,
    %c0_2 = arith.constant 0 : index
    %c0_3 = arith.constant 0 : index
    %c0_4 = arith.constant 0 : index
    %c0_5 = arith.constant 0 : index
    %2 = vector.load %arg1[%c0_2, %c0_3, %c0_4, %c0_5] : memref<1x4x16x16xf32, #tpu.memory_space<vmem>>, vector<1x4x16x16xf32>
    %3 = vector.shape_cast %2 : vector<1x4x16x16xf32> to vector<4x16x16xf32>
    %c0_6 = arith.constant 0 : index
    %c1 = arith.constant 1 : index
    %c1_7 = arith.constant 1 : index
    %4 = vector.load %arg5[%c0_6, %c1, %c1_7] : memref<4x18x18xf32, #tpu.memory_space<vmem>>, vector<4x16x16xf32>
    tpu.vector_store %arg5[%c0_6, %c1, %c1_7], %3 {strides = array<i32>} : memref<4x18x18xf32, #tpu.memory_space<vmem>>, vector<4x16x16xf32>,
    %c0_8 = arith.constant 0 : index
    %5 = memref.load %arg3[%c0_8] : memref<1xf32, #tpu.memory_space<smem>>
    %6 = vector.broadcast %5 : f32 to vector<16x16xf32>
    %c0_9 = arith.constant 0 : index
    %c0_10 = arith.constant 0 : index
    %c0_11 = arith.constant 0 : index
    %7 = vector.load %arg5[%c0_9, %c0_10, %c0_11] : memref<4x18x18xf32, #tpu.memory_space<vmem>>, vector<1x16x16xf32>
    %8 = vector.shape_cast %7 : vector<1x16x16xf32> to vector<16x16xf32>
    %c0_12 = arith.constant 0 : index
    %9 = memref.load %arg2[%c0_12] : memref<36xf32, #tpu.memory_space<smem>>
    %10 = vector.broadcast %9 : f32 to vector<16x16xf32>
    %11 = arith.mulf %10, %8 : vector<16x16xf32>
    %12 = arith.addf %6, %11 : vector<16x16xf32>
    %c0_13 = arith.constant 0 : index
    %c0_14 = arith.constant 0 : index
    %c1_15 = arith.constant 1 : index
    %13 = vector.load %arg5[%c0_13, %c0_14, %c1_15] : memref<4x18x18xf32, #tpu.memory_space<vmem>>, vector<1x16x16xf32>
    %14 = vector.shape_cast %13 : vector<1x16x16xf32> to vector<16x16xf32>
    %c1_16 = arith.constant 1 : index
    %15 = memref.load %arg2[%c1_16] : memref<36xf32, #tpu.memory_space<smem>>
    %16 = vector.broadcast %15 : f32 to vector<16x16xf32>
    %17 = arith.mulf %16, %14 : vector<16x16xf32>
    %18 = arith.addf %12, %17 : vector<16x16xf32>
    %c0_17 = arith.constant 0 : index
    %c0_18 = arith.constant 0 : index
    %c2 = arith.constant 2 : index
    %19 = vector.load %arg5[%c0_17, %c0_18, %c2] : memref<4x18x18xf32, #tpu.memory_space<vmem>>, vector<1x16x16xf32>
    %20 = vector.shape_cast %19 : vector<1x16x16xf32> to vector<16x16xf32>
    %c2_19 = arith.constant 2 : index
    %21 = memref.load %arg2[%c2_19] : memref<36xf32, #tpu.memory_space<smem>>
    %22 = vector.broadcast %21 : f32 to vector<16x16xf32>
    %23 = arith.mulf %22, %20 : vector<16x16xf32>
    %24 = arith.addf %18, %23 : vector<16x16xf32>
    %c0_20 = arith.constant 0 : index
    %c1_21 = arith.constant 1 : index
    %c0_22 = arith.constant 0 : index
    %25 = vector.load %arg5[%c0_20, %c1_21, %c0_22] : memref<4x18x18xf32, #tpu.memory_space<vmem>>, vector<1x16x16xf32>
    %26 = vector.shape_cast %25 : vector<1x16x16xf32> to vector<16x16xf32>
    %c3 = arith.constant 3 : index
    %27 = memref.load %arg2[%c3] : memref<36xf32, #tpu.memory_space<smem>>
    %28 = vector.broadcast %27 : f32 to vector<16x16xf32>
    %29 = arith.mulf %28, %26 : vector<16x16xf32>
    %30 = arith.addf %24, %29 : vector<16x16xf32>
    %c0_23 = arith.constant 0 : index
    %c1_24 = arith.constant 1 : index
    %c1_25 = arith.constant 1 : index
    %31 = vector.load %arg5[%c0_23, %c1_24, %c1_25] : memref<4x18x18xf32, #tpu.memory_space<vmem>>, vector<1x16x16xf32>
    %32 = vector.shape_cast %31 : vector<1x16x16xf32> to vector<16x16xf32>
    %c4 = arith.constant 4 : index
    %33 = memref.load %arg2[%c4] : memref<36xf32, #tpu.memory_space<smem>>
    %34 = vector.broadcast %33 : f32 to vector<16x16xf32>
    %35 = arith.mulf %34, %32 : vector<16x16xf32>
    %36 = arith.addf %30, %35 : vector<16x16xf32>
    %c0_26 = arith.constant 0 : index
    %c1_27 = arith.constant 1 : index
    %c2_28 = arith.constant 2 : index
    %37 = vector.load %arg5[%c0_26, %c1_27, %c2_28] : memref<4x18x18xf32, #tpu.memory_space<vmem>>, vector<1x16x16xf32>
    %38 = vector.shape_cast %37 : vector<1x16x16xf32> to vector<16x16xf32>
    %c5 = arith.constant 5 : index
    %39 = memref.load %arg2[%c5] : memref<36xf32, #tpu.memory_space<smem>>
    %40 = vector.broadcast %39 : f32 to vector<16x16xf32>
    %41 = arith.mulf %40, %38 : vector<16x16xf32>
    %42 = arith.addf %36, %41 : vector<16x16xf32>
    %c0_29 = arith.constant 0 : index
    %c2_30 = arith.constant 2 : index
    %c0_31 = arith.constant 0 : index
    %43 = vector.load %arg5[%c0_29, %c2_30, %c0_31] : memref<4x18x18xf32, #tpu.memory_space<vmem>>, vector<1x16x16xf32>
    %44 = vector.shape_cast %43 : vector<1x16x16xf32> to vector<16x16xf32>
    %c6 = arith.constant 6 : index
    %45 = memref.load %arg2[%c6] : memref<36xf32, #tpu.memory_space<smem>>
    %46 = vector.broadcast %45 : f32 to vector<16x16xf32>
    %47 = arith.mulf %46, %44 : vector<16x16xf32>
    %48 = arith.addf %42, %47 : vector<16x16xf32>
    %c0_32 = arith.constant 0 : index
    %c2_33 = arith.constant 2 : index
    %c1_34 = arith.constant 1 : index
    %49 = vector.load %arg5[%c0_32, %c2_33, %c1_34] : memref<4x18x18xf32, #tpu.memory_space<vmem>>, vector<1x16x16xf32>
    %50 = vector.shape_cast %49 : vector<1x16x16xf32> to vector<16x16xf32>
    %c7 = arith.constant 7 : index
    %51 = memref.load %arg2[%c7] : memref<36xf32, #tpu.memory_space<smem>>
    %52 = vector.broadcast %51 : f32 to vector<16x16xf32>
    %53 = arith.mulf %52, %50 : vector<16x16xf32>
    %54 = arith.addf %48, %53 : vector<16x16xf32>
    %c0_35 = arith.constant 0 : index
    %c2_36 = arith.constant 2 : index
    %c2_37 = arith.constant 2 : index
    %55 = vector.load %arg5[%c0_35, %c2_36, %c2_37] : memref<4x18x18xf32, #tpu.memory_space<vmem>>, vector<1x16x16xf32>
    %56 = vector.shape_cast %55 : vector<1x16x16xf32> to vector<16x16xf32>
    %c8 = arith.constant 8 : index
    %57 = memref.load %arg2[%c8] : memref<36xf32, #tpu.memory_space<smem>>
    %58 = vector.broadcast %57 : f32 to vector<16x16xf32>
    %59 = arith.mulf %58, %56 : vector<16x16xf32>
    %60 = arith.addf %54, %59 : vector<16x16xf32>
    %c1_38 = arith.constant 1 : index
    %c0_39 = arith.constant 0 : index
    %c0_40 = arith.constant 0 : index
    %61 = vector.load %arg5[%c1_38, %c0_39, %c0_40] : memref<4x18x18xf32, #tpu.memory_space<vmem>>, vector<1x16x16xf32>
    %62 = vector.shape_cast %61 : vector<1x16x16xf32> to vector<16x16xf32>
    %c9 = arith.constant 9 : index
    %63 = memref.load %arg2[%c9] : memref<36xf32, #tpu.memory_space<smem>>
    %64 = vector.broadcast %63 : f32 to vector<16x16xf32>
    %65 = arith.mulf %64, %62 : vector<16x16xf32>
    %66 = arith.addf %60, %65 : vector<16x16xf32>
    %c1_41 = arith.constant 1 : index
    %c0_42 = arith.constant 0 : index
    %c1_43 = arith.constant 1 : index
    %67 = vector.load %arg5[%c1_41, %c0_42, %c1_43] : memref<4x18x18xf32, #tpu.memory_space<vmem>>, vector<1x16x16xf32>
    %68 = vector.shape_cast %67 : vector<1x16x16xf32> to vector<16x16xf32>
    %c10 = arith.constant 10 : index
    %69 = memref.load %arg2[%c10] : memref<36xf32, #tpu.memory_space<smem>>
    %70 = vector.broadcast %69 : f32 to vector<16x16xf32>
    %71 = arith.mulf %70, %68 : vector<16x16xf32>
    %72 = arith.addf %66, %71 : vector<16x16xf32>
    %c1_44 = arith.constant 1 : index
    %c0_45 = arith.constant 0 : index
    %c2_46 = arith.constant 2 : index
    %73 = vector.load %arg5[%c1_44, %c0_45, %c2_46] : memref<4x18x18xf32, #tpu.memory_space<vmem>>, vector<1x16x16xf32>
    %74 = vector.shape_cast %73 : vector<1x16x16xf32> to vector<16x16xf32>
    %c11 = arith.constant 11 : index
    %75 = memref.load %arg2[%c11] : memref<36xf32, #tpu.memory_space<smem>>
    %76 = vector.broadcast %75 : f32 to vector<16x16xf32>
    %77 = arith.mulf %76, %74 : vector<16x16xf32>
    %78 = arith.addf %72, %77 : vector<16x16xf32>
    %c1_47 = arith.constant 1 : index
    %c1_48 = arith.constant 1 : index
    %c0_49 = arith.constant 0 : index
    %79 = vector.load %arg5[%c1_47, %c1_48, %c0_49] : memref<4x18x18xf32, #tpu.memory_space<vmem>>, vector<1x16x16xf32>
    %80 = vector.shape_cast %79 : vector<1x16x16xf32> to vector<16x16xf32>
    %c12 = arith.constant 12 : index
    %81 = memref.load %arg2[%c12] : memref<36xf32, #tpu.memory_space<smem>>
    %82 = vector.broadcast %81 : f32 to vector<16x16xf32>
    %83 = arith.mulf %82, %80 : vector<16x16xf32>
    %84 = arith.addf %78, %83 : vector<16x16xf32>
    %c1_50 = arith.constant 1 : index
    %c1_51 = arith.constant 1 : index
    %c1_52 = arith.constant 1 : index
    %85 = vector.load %arg5[%c1_50, %c1_51, %c1_52] : memref<4x18x18xf32, #tpu.memory_space<vmem>>, vector<1x16x16xf32>
    %86 = vector.shape_cast %85 : vector<1x16x16xf32> to vector<16x16xf32>
    %c13 = arith.constant 13 : index
    %87 = memref.load %arg2[%c13] : memref<36xf32, #tpu.memory_space<smem>>
    %88 = vector.broadcast %87 : f32 to vector<16x16xf32>
    %89 = arith.mulf %88, %86 : vector<16x16xf32>
    %90 = arith.addf %84, %89 : vector<16x16xf32>
    %c1_53 = arith.constant 1 : index
    %c1_54 = arith.constant 1 : index
    %c2_55 = arith.constant 2 : index
    %91 = vector.load %arg5[%c1_53, %c1_54, %c2_55] : memref<4x18x18xf32, #tpu.memory_space<vmem>>, vector<1x16x16xf32>
    %92 = vector.shape_cast %91 : vector<1x16x16xf32> to vector<16x16xf32>
    %c14 = arith.constant 14 : index
    %93 = memref.load %arg2[%c14] : memref<36xf32, #tpu.memory_space<smem>>
    %94 = vector.broadcast %93 : f32 to vector<16x16xf32>
    %95 = arith.mulf %94, %92 : vector<16x16xf32>
    %96 = arith.addf %90, %95 : vector<16x16xf32>
    %c1_56 = arith.constant 1 : index
    %c2_57 = arith.constant 2 : index
    %c0_58 = arith.constant 0 : index
    %97 = vector.load %arg5[%c1_56, %c2_57, %c0_58] : memref<4x18x18xf32, #tpu.memory_space<vmem>>, vector<1x16x16xf32>
    %98 = vector.shape_cast %97 : vector<1x16x16xf32> to vector<16x16xf32>
    %c15 = arith.constant 15 : index
    %99 = memref.load %arg2[%c15] : memref<36xf32, #tpu.memory_space<smem>>
    %100 = vector.broadcast %99 : f32 to vector<16x16xf32>
    %101 = arith.mulf %100, %98 : vector<16x16xf32>
    %102 = arith.addf %96, %101 : vector<16x16xf32>
    %c1_59 = arith.constant 1 : index
    %c2_60 = arith.constant 2 : index
    %c1_61 = arith.constant 1 : index
    %103 = vector.load %arg5[%c1_59, %c2_60, %c1_61] : memref<4x18x18xf32, #tpu.memory_space<vmem>>, vector<1x16x16xf32>
    %104 = vector.shape_cast %103 : vector<1x16x16xf32> to vector<16x16xf32>
    %c16 = arith.constant 16 : index
    %105 = memref.load %arg2[%c16] : memref<36xf32, #tpu.memory_space<smem>>
    %106 = vector.broadcast %105 : f32 to vector<16x16xf32>
    %107 = arith.mulf %106, %104 : vector<16x16xf32>
    %108 = arith.addf %102, %107 : vector<16x16xf32>
    %c1_62 = arith.constant 1 : index
    %c2_63 = arith.constant 2 : index
    %c2_64 = arith.constant 2 : index
    %109 = vector.load %arg5[%c1_62, %c2_63, %c2_64] : memref<4x18x18xf32, #tpu.memory_space<vmem>>, vector<1x16x16xf32>
    %110 = vector.shape_cast %109 : vector<1x16x16xf32> to vector<16x16xf32>
    %c17 = arith.constant 17 : index
    %111 = memref.load %arg2[%c17] : memref<36xf32, #tpu.memory_space<smem>>
    %112 = vector.broadcast %111 : f32 to vector<16x16xf32>
    %113 = arith.mulf %112, %110 : vector<16x16xf32>
    %114 = arith.addf %108, %113 : vector<16x16xf32>
    %c2_65 = arith.constant 2 : index
    %c0_66 = arith.constant 0 : index
    %c0_67 = arith.constant 0 : index
    %115 = vector.load %arg5[%c2_65, %c0_66, %c0_67] : memref<4x18x18xf32, #tpu.memory_space<vmem>>, vector<1x16x16xf32>
    %116 = vector.shape_cast %115 : vector<1x16x16xf32> to vector<16x16xf32>
    %c18 = arith.constant 18 : index
    %117 = memref.load %arg2[%c18] : memref<36xf32, #tpu.memory_space<smem>>
    %118 = vector.broadcast %117 : f32 to vector<16x16xf32>
    %119 = arith.mulf %118, %116 : vector<16x16xf32>
    %120 = arith.addf %114, %119 : vector<16x16xf32>
    %c2_68 = arith.constant 2 : index
    %c0_69 = arith.constant 0 : index
    %c1_70 = arith.constant 1 : index
    %121 = vector.load %arg5[%c2_68, %c0_69, %c1_70] : memref<4x18x18xf32, #tpu.memory_space<vmem>>, vector<1x16x16xf32>
    %122 = vector.shape_cast %121 : vector<1x16x16xf32> to vector<16x16xf32>
    %c19 = arith.constant 19 : index
    %123 = memref.load %arg2[%c19] : memref<36xf32, #tpu.memory_space<smem>>
    %124 = vector.broadcast %123 : f32 to vector<16x16xf32>
    %125 = arith.mulf %124, %122 : vector<16x16xf32>
    %126 = arith.addf %120, %125 : vector<16x16xf32>
    %c2_71 = arith.constant 2 : index
    %c0_72 = arith.constant 0 : index
    %c2_73 = arith.constant 2 : index
    %127 = vector.load %arg5[%c2_71, %c0_72, %c2_73] : memref<4x18x18xf32, #tpu.memory_space<vmem>>, vector<1x16x16xf32>
    %128 = vector.shape_cast %127 : vector<1x16x16xf32> to vector<16x16xf32>
    %c20 = arith.constant 20 : index
    %129 = memref.load %arg2[%c20] : memref<36xf32, #tpu.memory_space<smem>>
    %130 = vector.broadcast %129 : f32 to vector<16x16xf32>
    %131 = arith.mulf %130, %128 : vector<16x16xf32>
    %132 = arith.addf %126, %131 : vector<16x16xf32>
    %c2_74 = arith.constant 2 : index
    %c1_75 = arith.constant 1 : index
    %c0_76 = arith.constant 0 : index
    %133 = vector.load %arg5[%c2_74, %c1_75, %c0_76] : memref<4x18x18xf32, #tpu.memory_space<vmem>>, vector<1x16x16xf32>
    %134 = vector.shape_cast %133 : vector<1x16x16xf32> to vector<16x16xf32>
    %c21 = arith.constant 21 : index
    %135 = memref.load %arg2[%c21] : memref<36xf32, #tpu.memory_space<smem>>
    %136 = vector.broadcast %135 : f32 to vector<16x16xf32>
    %137 = arith.mulf %136, %134 : vector<16x16xf32>
    %138 = arith.addf %132, %137 : vector<16x16xf32>
    %c2_77 = arith.constant 2 : index
    %c1_78 = arith.constant 1 : index
    %c1_79 = arith.constant 1 : index
    %139 = vector.load %arg5[%c2_77, %c1_78, %c1_79] : memref<4x18x18xf32, #tpu.memory_space<vmem>>, vector<1x16x16xf32>
    %140 = vector.shape_cast %139 : vector<1x16x16xf32> to vector<16x16xf32>
    %c22 = arith.constant 22 : index
    %141 = memref.load %arg2[%c22] : memref<36xf32, #tpu.memory_space<smem>>
    %142 = vector.broadcast %141 : f32 to vector<16x16xf32>
    %143 = arith.mulf %142, %140 : vector<16x16xf32>
    %144 = arith.addf %138, %143 : vector<16x16xf32>
    %c2_80 = arith.constant 2 : index
    %c1_81 = arith.constant 1 : index
    %c2_82 = arith.constant 2 : index
    %145 = vector.load %arg5[%c2_80, %c1_81, %c2_82] : memref<4x18x18xf32, #tpu.memory_space<vmem>>, vector<1x16x16xf32>
    %146 = vector.shape_cast %145 : vector<1x16x16xf32> to vector<16x16xf32>
    %c23 = arith.constant 23 : index
    %147 = memref.load %arg2[%c23] : memref<36xf32, #tpu.memory_space<smem>>
    %148 = vector.broadcast %147 : f32 to vector<16x16xf32>
    %149 = arith.mulf %148, %146 : vector<16x16xf32>
    %150 = arith.addf %144, %149 : vector<16x16xf32>
    %c2_83 = arith.constant 2 : index
    %c2_84 = arith.constant 2 : index
    %c0_85 = arith.constant 0 : index
    %151 = vector.load %arg5[%c2_83, %c2_84, %c0_85] : memref<4x18x18xf32, #tpu.memory_space<vmem>>, vector<1x16x16xf32>
    %152 = vector.shape_cast %151 : vector<1x16x16xf32> to vector<16x16xf32>
    %c24 = arith.constant 24 : index
    %153 = memref.load %arg2[%c24] : memref<36xf32, #tpu.memory_space<smem>>
    %154 = vector.broadcast %153 : f32 to vector<16x16xf32>
    %155 = arith.mulf %154, %152 : vector<16x16xf32>
    %156 = arith.addf %150, %155 : vector<16x16xf32>
    %c2_86 = arith.constant 2 : index
    %c2_87 = arith.constant 2 : index
    %c1_88 = arith.constant 1 : index
    %157 = vector.load %arg5[%c2_86, %c2_87, %c1_88] : memref<4x18x18xf32, #tpu.memory_space<vmem>>, vector<1x16x16xf32>
    %158 = vector.shape_cast %157 : vector<1x16x16xf32> to vector<16x16xf32>
    %c25 = arith.constant 25 : index
    %159 = memref.load %arg2[%c25] : memref<36xf32, #tpu.memory_space<smem>>
    %160 = vector.broadcast %159 : f32 to vector<16x16xf32>
    %161 = arith.mulf %160, %158 : vector<16x16xf32>
    %162 = arith.addf %156, %161 : vector<16x16xf32>
    %c2_89 = arith.constant 2 : index
    %c2_90 = arith.constant 2 : index
    %c2_91 = arith.constant 2 : index
    %163 = vector.load %arg5[%c2_89, %c2_90, %c2_91] : memref<4x18x18xf32, #tpu.memory_space<vmem>>, vector<1x16x16xf32>
    %164 = vector.shape_cast %163 : vector<1x16x16xf32> to vector<16x16xf32>
    %c26 = arith.constant 26 : index
    %165 = memref.load %arg2[%c26] : memref<36xf32, #tpu.memory_space<smem>>
    %166 = vector.broadcast %165 : f32 to vector<16x16xf32>
    %167 = arith.mulf %166, %164 : vector<16x16xf32>
    %168 = arith.addf %162, %167 : vector<16x16xf32>
    %c3_92 = arith.constant 3 : index
    %c0_93 = arith.constant 0 : index
    %c0_94 = arith.constant 0 : index
    %169 = vector.load %arg5[%c3_92, %c0_93, %c0_94] : memref<4x18x18xf32, #tpu.memory_space<vmem>>, vector<1x16x16xf32>
    %170 = vector.shape_cast %169 : vector<1x16x16xf32> to vector<16x16xf32>
    %c27 = arith.constant 27 : index
    %171 = memref.load %arg2[%c27] : memref<36xf32, #tpu.memory_space<smem>>
    %172 = vector.broadcast %171 : f32 to vector<16x16xf32>
    %173 = arith.mulf %172, %170 : vector<16x16xf32>
    %174 = arith.addf %168, %173 : vector<16x16xf32>
    %c3_95 = arith.constant 3 : index
    %c0_96 = arith.constant 0 : index
    %c1_97 = arith.constant 1 : index
    %175 = vector.load %arg5[%c3_95, %c0_96, %c1_97] : memref<4x18x18xf32, #tpu.memory_space<vmem>>, vector<1x16x16xf32>
    %176 = vector.shape_cast %175 : vector<1x16x16xf32> to vector<16x16xf32>
    %c28 = arith.constant 28 : index
    %177 = memref.load %arg2[%c28] : memref<36xf32, #tpu.memory_space<smem>>
    %178 = vector.broadcast %177 : f32 to vector<16x16xf32>
    %179 = arith.mulf %178, %176 : vector<16x16xf32>
    %180 = arith.addf %174, %179 : vector<16x16xf32>
    %c3_98 = arith.constant 3 : index
    %c0_99 = arith.constant 0 : index
    %c2_100 = arith.constant 2 : index
    %181 = vector.load %arg5[%c3_98, %c0_99, %c2_100] : memref<4x18x18xf32, #tpu.memory_space<vmem>>, vector<1x16x16xf32>
    %182 = vector.shape_cast %181 : vector<1x16x16xf32> to vector<16x16xf32>
    %c29 = arith.constant 29 : index
    %183 = memref.load %arg2[%c29] : memref<36xf32, #tpu.memory_space<smem>>
    %184 = vector.broadcast %183 : f32 to vector<16x16xf32>
    %185 = arith.mulf %184, %182 : vector<16x16xf32>
    %186 = arith.addf %180, %185 : vector<16x16xf32>
    %c3_101 = arith.constant 3 : index
    %c1_102 = arith.constant 1 : index
    %c0_103 = arith.constant 0 : index
    %187 = vector.load %arg5[%c3_101, %c1_102, %c0_103] : memref<4x18x18xf32, #tpu.memory_space<vmem>>, vector<1x16x16xf32>
    %188 = vector.shape_cast %187 : vector<1x16x16xf32> to vector<16x16xf32>
    %c30 = arith.constant 30 : index
    %189 = memref.load %arg2[%c30] : memref<36xf32, #tpu.memory_space<smem>>
    %190 = vector.broadcast %189 : f32 to vector<16x16xf32>
    %191 = arith.mulf %190, %188 : vector<16x16xf32>
    %192 = arith.addf %186, %191 : vector<16x16xf32>
    %c3_104 = arith.constant 3 : index
    %c1_105 = arith.constant 1 : index
    %c1_106 = arith.constant 1 : index
    %193 = vector.load %arg5[%c3_104, %c1_105, %c1_106] : memref<4x18x18xf32, #tpu.memory_space<vmem>>, vector<1x16x16xf32>
    %194 = vector.shape_cast %193 : vector<1x16x16xf32> to vector<16x16xf32>
    %c31 = arith.constant 31 : index
    %195 = memref.load %arg2[%c31] : memref<36xf32, #tpu.memory_space<smem>>
    %196 = vector.broadcast %195 : f32 to vector<16x16xf32>
    %197 = arith.mulf %196, %194 : vector<16x16xf32>
    %198 = arith.addf %192, %197 : vector<16x16xf32>
    %c3_107 = arith.constant 3 : index
    %c1_108 = arith.constant 1 : index
    %c2_109 = arith.constant 2 : index
    %199 = vector.load %arg5[%c3_107, %c1_108, %c2_109] : memref<4x18x18xf32, #tpu.memory_space<vmem>>, vector<1x16x16xf32>
    %200 = vector.shape_cast %199 : vector<1x16x16xf32> to vector<16x16xf32>
    %c32 = arith.constant 32 : index
    %201 = memref.load %arg2[%c32] : memref<36xf32, #tpu.memory_space<smem>>
    %202 = vector.broadcast %201 : f32 to vector<16x16xf32>
    %203 = arith.mulf %202, %200 : vector<16x16xf32>
    %204 = arith.addf %198, %203 : vector<16x16xf32>
    %c3_110 = arith.constant 3 : index
    %c2_111 = arith.constant 2 : index
    %c0_112 = arith.constant 0 : index
    %205 = vector.load %arg5[%c3_110, %c2_111, %c0_112] : memref<4x18x18xf32, #tpu.memory_space<vmem>>, vector<1x16x16xf32>
    %206 = vector.shape_cast %205 : vector<1x16x16xf32> to vector<16x16xf32>
    %c33 = arith.constant 33 : index
    %207 = memref.load %arg2[%c33] : memref<36xf32, #tpu.memory_space<smem>>
    %208 = vector.broadcast %207 : f32 to vector<16x16xf32>
    %209 = arith.mulf %208, %206 : vector<16x16xf32>
    %210 = arith.addf %204, %209 : vector<16x16xf32>
    %c3_113 = arith.constant 3 : index
    %c2_114 = arith.constant 2 : index
    %c1_115 = arith.constant 1 : index
    %211 = vector.load %arg5[%c3_113, %c2_114, %c1_115] : memref<4x18x18xf32, #tpu.memory_space<vmem>>, vector<1x16x16xf32>
    %212 = vector.shape_cast %211 : vector<1x16x16xf32> to vector<16x16xf32>
    %c34 = arith.constant 34 : index
    %213 = memref.load %arg2[%c34] : memref<36xf32, #tpu.memory_space<smem>>
    %214 = vector.broadcast %213 : f32 to vector<16x16xf32>
    %215 = arith.mulf %214, %212 : vector<16x16xf32>
    %216 = arith.addf %210, %215 : vector<16x16xf32>
    %c3_116 = arith.constant 3 : index
    %c2_117 = arith.constant 2 : index
    %c2_118 = arith.constant 2 : index
    %217 = vector.load %arg5[%c3_116, %c2_117, %c2_118] : memref<4x18x18xf32, #tpu.memory_space<vmem>>, vector<1x16x16xf32>
    %218 = vector.shape_cast %217 : vector<1x16x16xf32> to vector<16x16xf32>
    %c35 = arith.constant 35 : index
    %219 = memref.load %arg2[%c35] : memref<36xf32, #tpu.memory_space<smem>>
    %220 = vector.broadcast %219 : f32 to vector<16x16xf32>
    %221 = arith.mulf %220, %218 : vector<16x16xf32>
    %222 = arith.addf %216, %221 : vector<16x16xf32>
    %c0_119 = arith.constant 0 : index
    %c0_120 = arith.constant 0 : index
    %c0_121 = arith.constant 0 : index
    %223 = vector.load %arg4[%c0_119, %c0_120, %c0_121] : memref<1x16x16xf32, #tpu.memory_space<vmem>>, vector<1x16x16xf32>
    %224 = vector.shape_cast %223 : vector<1x16x16xf32> to vector<16x16xf32>
    %225 = vector.shape_cast %222 : vector<16x16xf32> to vector<1x16x16xf32>
    tpu.vector_store %arg4[%c0_119, %c0_120, %c0_121], %225 {strides = array<i32>} : memref<1x16x16xf32, #tpu.memory_space<vmem>>, vector<1x16x16xf32>,
    return
  }
  func.func @transform_0(%arg0: i32) -> (i32, i32, i32, i32) {
    %c0_i32 = arith.constant 0 : i32
    %c0_i32_0 = arith.constant 0 : i32
    %c0_i32_1 = arith.constant 0 : i32
    %c0_i32_2 = arith.constant 0 : i32
    return %arg0, %c0_i32, %c0_i32_0, %c0_i32_1 : i32, i32, i32, i32
  }
  func.func @transform_1(%arg0: i32) -> i32 {
    %c0_i32 = arith.constant 0 : i32
    %c0_i32_0 = arith.constant 0 : i32
    return %c0_i32 : i32
  }
  func.func @transform_2(%arg0: i32) -> i32 {
    %c0_i32 = arith.constant 0 : i32
    %c0_i32_0 = arith.constant 0 : i32
    return %c0_i32 : i32
  }
  func.func @transform_3(%arg0: i32) -> (i32, i32, i32) {
    %c0_i32 = arith.constant 0 : i32
    %c0_i32_0 = arith.constant 0 : i32
    %c0_i32_1 = arith.constant 0 : i32
    return %arg0, %c0_i32, %c0_i32_0 : i32, i32, i32
  }
}

</mosaic_0001>

<bundles_post_ra>
// kernel: tpu_custom_call.1
= control target key start
LH: loop header
LB: loop body
LE: loop exit
PB: predicated region body
PF: predicated region fallthrough
CT: control target
= control target key end

     0   :  { %s1460_s0 = inlined_call_operand.hbm [shape: f32[2,4,16,16], index: 0, kind: input, shape index: {}]   ;;  %s1461_s1 = inlined_call_operand.vmem [shape: f32[36], index: 1, kind: input, shape index: {}]   ;;  %s1462_s2 = inlined_call_operand.<no memory space> [shape: f32[1], index: 2, kind: input, shape index: {}]   ;;  %s1463_s3 = inlined_call_operand.hbm [shape: f32[2,16,16], index: 3, kind: output, shape index: {}]  }
   0x1   :  { %8 = sst [smem:[#allocation3]] %s1462_s2 }
   0x2   :  { %9 = vsyncpa [#allocation5], 0 }
   0x3   :  { %11 = vsyncpa [#allocation5 + $0x1], 0 }
   0x4   :  { %12 = vsyncpa [#allocation7], 0 }
   0x5   :  { %13 = vsyncpa [#allocation6], 0 }
   0x6   :  { %15 = vsyncpa [#allocation6 + $0x1], 0  ;;  %s1075_s14 = smov 0   ;;  %s1077_s15 = smov 0  }
   0x7   :  { %s1079_s16 = smov 0   ;;  %s1081_s17 = smov 0  }
   0x8 LB: > { %s1096_s2 = sadd.s32 4294967295, %s1039_s17   ;;  %s806_s18 = sadd.s32 4294967294, %s1039_s17   ;;  %s1039_s17 = sphi %s1081_s17, %s1483_s17   ;;  %s1035_s16 = sphi %s1079_s16, %s1482_s16   ;;  %s1031_s15 = sphi %s1077_s15, %s1481_s15   ;;  %s1027_s14 = sphi %s1075_s14, %s1480_s14  }
   0x9   : > { %s1100_s19 = sadd.s32 1, %s1039_s17   ;;  %s28_s20 = sadd.s32 1, %s1035_s16 }
   0xa   : > { %s25_s21 = ssub.s32 %s1039_s17, %s1100_s19  ;;  %p35_p0 = scmp.ne.s32.totalorder %s1035_s16, %s1031_s15 }
   0xb   : > { %p26_p1 = scmp.eq.s32.totalorder %s25_s21, 0  ;;  %p36_p2 = scmp.eq.s32.totalorder %s1039_s17, 0 }
   0xc   : > { %p41_p3 = scmp.ne.s32.totalorder %s1031_s15, %s1027_s14  ;;  %p1465_p4 = scmp.eq.s32.totalorder %s1096_s2, 0 }
   0xd   : > { %s1112_s22 = scalar_select %p26_p1, %s1035_s16, %s28_s20  }
   0xe   : > { %p1114_p5 = por %p36_p2, %p35_p0  ;;  %p1120_p6 = por %p1465_p4, %p41_p3 }
   0xf   : > { %p107_p7 = scmp.eq.s32.totalorder %s1096_s2, 1  ;;  %p113_p8 = scmp.eq.s32.totalorder %s806_s18, 1 }
  0x10   : > { %s1468_s24 = scalar_select %p1120_p6, 1, 0 }
  0x11   : > { %p807_p9 = scmp.ge.s32.totalorder %s1039_s17, 1  ;;  %p120_p10 = scmp.lt.s32.totalorder %s1039_s17, 3 }
  0x12   : > { %p1127_p11 = por %p107_p7, %p35_p0  ;;  %p1131_p12 = por %p113_p8, %p41_p3 }
  0x13   : > { %p1135_p13 = pnand %p807_p9, %p120_p10  ;;  %s133_s30 = sshll.u32 %s1461_s1, 4  ;;  %s134_s30 = int_to_ptr.vmem [resolvable:$true] %s133_s30 }
  0x14   : > { %s1469_s25 = scalar_select %p1127_p11, 1, 0 }
  0x15   : > { %s1470_s26 = scalar_select %p1131_p12, 1, 0 }
  0x16   : > { %p867_p1 = pneg %p1135_p13  ;;  %p880_p2 = scmp.lt.s32.totalorder %s1039_s17, 2 }
  0x17   : > { %s147_s5 = sand.u32 1, %s1035_s16   ;;  %s924_s8 = scalar_lea.vmem %s134_s30, 16 }
  0x18   : > { %p1148_p7 = pnand %p867_p1, %p1465_p4  ;;  %p1155_p3 = pnand %p880_p2, %p1114_p5 }
  0x19   : > { %s810_s7 = sshll.u32 %s147_s5, 6  ;;  %p925_p8 = scmp.ne.s32.totalorder %s134_s30, %s924_s8 }
  0x1a   : > { %p926_p9 = pneg %p1148_p7  ;;  %p932_p12 = scmp.lt.s32.totalorder %s134_s30, %s134_s30 }
  0x1b   : > { %p933_p11 = scmp.lt.s32.totalorder %s924_s8, %s924_s8 }
  0x1c   : > { %p927_p10 = pnand %p926_p9, %p925_p8 }
  0x1d   : > { %p934_p1 = por %p933_p11, %p932_p12 }
  0x1e   : > { %p928_p0 = pneg %p927_p10 }
  0x20   : > { %p935_p4 = pnand %p934_p1, %p928_p0 }
  0x22   : > { %938 = shalt.err (!%p935_p4)
}
  0x23   : > { %s1041_s9 = smov [#allocation8]   ;;  %s857_s10 = sshll.u32 %s1039_s17, 10 }
  0x24   : > { %870 = dma.vmem_to_smem (!%p1148_p7), %s134_s30, 16, %s1041_s9, [#allocation7]  }
  0x25   : > { %s151_s11 = scalar_lea.vmem [#allocation4], %s810_s7  ;;  %s1167_s20 = scalar_lea.hbm %s1460_s0, %s857_s10 }
  0x26   : > { %s158_s12 = sshll.u32 %s151_s11, 4  ;;  %s1171_s21 = scalar_lea.sflag [#allocation5], %s147_s5  ;;  %s1169_s12 = int_to_ptr.vmem [resolvable:$true] %s158_s12 }
  0x27   : > { %s939_s23 = scalar_lea.hbm %s1167_s20, 1024  ;;  %p941_p5 = pneg %p1155_p3 }
  0x28   : > { %p940_p4 = scmp.ne.s32.totalorder %s1167_s20, %s939_s23  ;;  %s944_s30 = scalar_lea.hbm %s1460_s0, 2048 }
  0x29   : > { %p945_p0 = scmp.lt.u32.totalorder %s1167_s20, %s1460_s0  ;;  %p946_p2 = scmp.lt.u32.totalorder %s944_s30, %s939_s23 }
  0x2a   : > { %p942_p11 = pnand %p941_p5, %p940_p4  ;;  %p948_p8 = scmp.lt.u32.totalorder %s939_s23, %s1167_s20 }
  0x2b   : > { %p947_p7 = por %p946_p2, %p945_p0 }
  0x2c   : > { %p943_p12 = pneg %p942_p11 }
  0x2d   : > { %p949_p9 = por %p948_p8, %p947_p7 }
  0x2f   : > { %p950_p10 = pnand %p949_p9, %p943_p12 }
  0x31   : > { %953 = shalt.err (!%p950_p10)
}
  0x32   : > { %s954_s5 = scalar_lea.vmem %s1169_s12, 1024  ;;  %s1042_s8 = smov [#allocation4]  }
  0x33   : > { %p955_p1 = scmp.ne.s32.totalorder %s1169_s12, %s954_s5  ;;  %s959_s9 = sshll.u32 %s1042_s8, 4  ;;  %s960_s9 = int_to_ptr.vmem [resolvable:$false] %s959_s9 }
  0x34   : > { %s961_s10 = scalar_lea.vmem %s960_s9, 2048  ;;  %p962_p6 = scmp.lt.s32.totalorder %s1169_s12, %s960_s9 }
  0x35   : > { %p957_p4 = pnand %p955_p1, %p941_p5  ;;  %p963_p0 = scmp.lt.s32.totalorder %s961_s10, %s954_s5 }
  0x37   : > { %p958_p11 = pneg %p957_p4  ;;  %p964_p2 = por %p963_p0, %p962_p6 }
  0x39   : > { %p965_p7 = pnand %p964_p2, %p958_p11 }
  0x3b   : > { %968 = shalt.err (!%p965_p7)
}
  0x3c   : > { %s1043_s11 = smov 128   ;;  %s1044_s13 = smov 8  }
  0x3d   : > { %874 = dma.hbm_to_vmem [thread:$0]  (!%p1155_p3), %s1167_s20, 1024, %s1169_s12, %s1171_s21, %s1043_s11, %s1043_s11, %s1044_s13  }
  0x3e   : > { %170 = sbr.rel (%p1135_p13) target bundleno = 430 (0x1ae), region = 32  ;;  %s1202_s18 = sand.u32 (!%p1135_p13), 1, %s1031_s15  }
  0x3f   : > { %s814_s23 = sshll.u32 (!%p1135_p13), %s1202_s18, 6  ;;  %s173_s28 = scalar_lea.sflag (!%p1135_p13), [#allocation5], %s1202_s18 }
  0x40   : > { %s1206_s29 = scalar_lea.vmem (!%p1135_p13), [#allocation4], %s814_s23  ;;  %p1474_p6 = scmp.ne.s32.totalorder (!%p1135_p13), %s1468_s24, 0 }
  0x45   : > { %1014 = dma.done.wait (%p1474_p6), %s173_s28, 1024  }
  0x46   : > { %1016 = vsyncadd (%p1474_p6), %s173_s28, 4294966272  ;;  %p1475_p3 = scmp.eq.s32.totalorder %s1096_s2, 0 }
  0x48   : > { %1018 = dma.done.wait (%p1475_p3), [#allocation7], 16   ;;  %p1476_p13 = pmov %p1475_p3 }
  0x4a   : > { %1020 = vsyncadd (%p1476_p13), [#allocation7], 4294967280 }
  0x4b   : > { %185 = sfence }
  0x4c   : > { %v218_v0 = vld [vmem:[%s1206_s29] sm:$0xff]  ;;  %v220_v1 = vld [vmem:[%s1206_s29 + $0x10] sm:$0xff]  ;;  %vm204_vm0 = vcmask 146432   ;;  %s1045_s27 = smov 1   ;;  %vm207_vm1 = vcmask 140288   ;;  %v219_v2 = vld [vmem:[%s1206_s29 + $0x8] sm:$0xff] }
  0x4d   : > { %234 = vrot.lane.b32.xlu0 %v218_v0, %s1045_s27  ;;  %238 = vrot.lane.b32.xlu1 %v220_v1, %s1045_s27  ;;  %v221_v3 = vld [vmem:[%s1206_s29 + $0x18] sm:$0xff]  ;;  %v1046_v4 = vmov 0.0   ;;  %v222_v5 = vld [vmem:[%s1206_s29 + $0x20] sm:$0xff]  ;;  %vm258_vm2 = vcmask 138248   ;;  %s817_s24 = sld [smem:[#allocation8 + $0x1]]  ;;  %s1226_s6 = sld [smem:[#allocation8 + $0x2]] }
  0x4e   : > { %205 = vst.msk [vmem:[#allocation2] sm:$0xff] %vm204_vm0, %v1046_v4  ;;  %206 = vst.msk [vmem:[#allocation2 + $0x8] sm:$0xff] %vm204_vm0, %v1046_v4  ;;  %v223_v6 = vld [vmem:[%s1206_s29 + $0x28] sm:$0xff]  ;;  %v224_v7 = vld [vmem:[%s1206_s29 + $0x30] sm:$0xff]  ;;  %s1230_s12 = sld [smem:[#allocation8 + $0x4]]  ;;  %s1238_s20 = sld [smem:[#allocation8 + $0x5]] }
  0x4f   : > { %209 = vst.msk [vmem:[#allocation2 + $0x18] sm:$0xff] %vm204_vm0, %v1046_v4  ;;  %210 = vst.msk [vmem:[#allocation2 + $0x20] sm:$0xff] %vm204_vm0, %v1046_v4  ;;  %v225_v8 = vld [vmem:[%s1206_s29 + $0x38] sm:$0xff]  ;;  %s1047_s21 = smov 127   ;;  %s823_s30 = sld [smem:[#allocation8 + $0x7]]  ;;  %vm704_vm3 = vcmask 130048  }
  0x50   : > { %212 = vst.msk [vmem:[#allocation2 + $0x30] sm:$0xff] %vm204_vm0, %v1046_v4  ;;  %213 = vst.msk [vmem:[#allocation2 + $0x38] sm:$0xff] %vm204_vm0, %v1046_v4  ;;  %s1048_s4 = smov 126   ;;  %s824_s7 = sld [smem:[#allocation8 + $0x8]] }
  0x51   : > { %215 = vst.msk [vmem:[#allocation2 + $0x48] sm:$0xff] %vm204_vm0, %v1046_v4  ;;  %216 = vst.msk [vmem:[#allocation2 + $0x50] sm:$0xff] %vm204_vm0, %v1046_v4  ;;  %236 = vrot.lane.b32.xlu0 %v219_v2, %s1045_s27  ;;  %240 = vrot.lane.b32.xlu1 %v221_v3, %s1045_s27  ;;  %s826_s5 = sld [smem:[#allocation8 + $0xa]]  ;;  %s827_s8 = sld [smem:[#allocation8 + $0xb]] }
  0x52   : > { %208 = vst.msk [vmem:[#allocation2 + $0x10] sm:$0x3] %vm207_vm1, %v1046_v4  ;;  %211 = vst.msk [vmem:[#allocation2 + $0x28] sm:$0x3] %vm207_vm1, %v1046_v4  ;;  %s829_s9 = sld [smem:[#allocation8 + $0xd]]  ;;  %s830_s10 = sld [smem:[#allocation8 + $0xe]] }
  0x53   : > { %214 = vst.msk [vmem:[#allocation2 + $0x40] sm:$0x3] %vm207_vm1, %v1046_v4  ;;  %217 = vst.msk [vmem:[#allocation2 + $0x58] sm:$0x3] %vm207_vm1, %v1046_v4  ;;  %v278_v13 = vstv %s817_s24  ;;  %v292_v18 = vstv %s1226_s6  ;;  %s832_s11 = sld [smem:[#allocation8 + $0x10]]  ;;  %s833_s13 = sld [smem:[#allocation8 + $0x11]] }
  0x54   : > { %v314_v25 = vstv %s1230_s12  ;;  %v328_v29 = vstv %s1238_s20  ;;  %s835_s23 = sld [smem:[#allocation8 + $0x13]]  ;;  %s836_s28 = sld [smem:[#allocation8 + $0x14]] }
  0x55   : > { %242 = vrot.lane.b32.xlu0 %v222_v5, %s1045_s27  ;;  %244 = vrot.lane.b32.xlu1 %v223_v6, %s1045_s27  ;;  %v350_v33 = vstv %s823_s30  ;;  %s838_s29 = sld [smem:[#allocation8 + $0x16]]  ;;  %s841_s24 = sld [smem:[#allocation8 + $0x19]] }
  0x56   : > { %v364_v37 = vstv %s824_s7  ;;  %s842_s6 = sld [smem:[#allocation8 + $0x1a]]  ;;  %s844_s12 = sld [smem:[#allocation8 + $0x1c]] }
  0x57   : > { %v387_v39 = vstv %s826_s5  ;;  %v401_v45 = vstv %s827_s8  ;;  %s845_s20 = sld [smem:[#allocation8 + $0x1d]]  ;;  %s847_s30 = sld [smem:[#allocation8 + $0x1f]] }
  0x58   : > { %v423_v49 = vstv %s829_s9  ;;  %v437_v53 = vstv %s830_s10  ;;  %s848_s7 = sld [smem:[#allocation8 + $0x20]]  ;;  %s850_s5 = sld [smem:[#allocation8 + $0x22]] }
  0x59   : > { %246 = vrot.lane.b32.xlu0 %v224_v7, %s1045_s27  ;;  %248 = vrot.lane.b32.xlu1 %v225_v8, %s1045_s27  ;;  %v459_v57 = vstv %s832_s11  ;;  %v473_v61 = vstv %s833_s13  ;;  %s839_s27 = sld [smem:[#allocation8 + $0x17]]  ;;  %s851_s8 = sld [smem:[#allocation8 + $0x23]] }
  0x5a   : > { %v496_v63 = vstv %s835_s23  ;;  %v510_v4 = vstv %s836_s28  ;;  %s271_s9 = sld [smem:[#allocation8]]  ;;  %s819_s11 = sld [smem:[#allocation8 + $0x3]] }
  0x5b   : > { %s267_s10 = sld [smem:[#allocation3]]  ;;  %s822_s13 = sld [smem:[#allocation8 + $0x6]] }
  0x5c   : > { %s831_s23 = sld [smem:[#allocation8 + $0xf]]  ;;  %s834_s28 = sld [smem:[#allocation8 + $0x12]] }
  0x5d   : > { %p1477_p12 = scmp.ne.s32.totalorder %s1469_s25, 0 }
  0xbf   : > { %v235_v9 = vpop.permute.xlu0 %234  ;;  %v239_v10 = vpop.permute.xlu1 %238 }
  0xc0   : > { %259 = vst.msk [vmem:[#allocation2 + $0x1] sm:$0xff] %vm258_vm2, %v235_v9  ;;  %261 = vst.msk [vmem:[#allocation2 + $0x19] sm:$0xff] %vm258_vm2, %v239_v10  ;;  %v532_v9 = vstv %s838_s29  ;;  %s837_s29 = sld [smem:[#allocation8 + $0x15]] }
  0xc3   : > { %v237_v11 = vpop.permute.xlu0 %236  ;;  %v241_v12 = vpop.permute.xlu1 %240 }
  0xc4   : > { %260 = vst.msk [vmem:[#allocation2 + $0x9] sm:$0xff] %vm258_vm2, %v237_v11  ;;  %262 = vst.msk [vmem:[#allocation2 + $0x21] sm:$0xff] %vm258_vm2, %v241_v12 }
  0xc7   : > { %v1232_v14 = vld [vmem:[#allocation2] sm:$0xff]  ;;  %v243_v15 = vpop.permute.xlu0 %242  ;;  %v245_v16 = vpop.permute.xlu1 %244  ;;  %v1271_v38 = vld [vmem:[#allocation2 + $0x18] sm:$0xff] }
  0xc8   : > { %v279_v17 = vmul.f32 %v278_v13, %v1232_v14  ;;  %263 = vst.msk [vmem:[#allocation2 + $0x31] sm:$0xff] %vm258_vm2, %v243_v15  ;;  %264 = vst.msk [vmem:[#allocation2 + $0x39] sm:$0xff] %vm258_vm2, %v245_v16  ;;  %v293_v23 = vmul.f32 %v292_v18, %v1232_v14  ;;  %v1247_v24 = vld [vmem:[#allocation2 + $0x1] sm:$0xff]  ;;  %v388_v42 = vmul.f32 %v387_v39, %v1271_v38  ;;  %v1285_v48 = vld [vmem:[#allocation2 + $0x19] sm:$0xff] }
  0xc9   : > { %v315_v27 = vmul.f32 %v314_v25, %v1247_v24  ;;  %v329_v31 = vmul.f32 %v328_v29, %v1247_v24  ;;  %v402_v47 = vmul.f32 %v401_v45, %v1271_v38  ;;  %v424_v51 = vmul.f32 %v423_v49, %v1285_v48 }
  0xca   : > { %283 = vrot.lane.b32.xlu0 %v279_v17, %s1047_s21  ;;  %v438_v55 = vmul.f32 %v437_v53, %v1285_v48 }
  0xcb   : > { %v1241_v19 = vld [vmem:[#allocation2 + $0x8] sm:$0xff]  ;;  %v247_v20 = vpop.permute.xlu0 %246  ;;  %v249_v21 = vpop.permute.xlu1 %248  ;;  %v1279_v44 = vld [vmem:[#allocation2 + $0x20] sm:$0xff] }
  0xcc   : > { %v280_v22 = vmul.f32 %v278_v13, %v1241_v19  ;;  %265 = vst.msk [vmem:[#allocation2 + $0x49] sm:$0xff] %vm258_vm2, %v247_v20  ;;  %266 = vst.msk [vmem:[#allocation2 + $0x51] sm:$0xff] %vm258_vm2, %v249_v21  ;;  %v294_v26 = vmul.f32 %v292_v18, %v1241_v19  ;;  %v1254_v28 = vld [vmem:[#allocation2 + $0x9] sm:$0xff]  ;;  %v389_v46 = vmul.f32 %v387_v39, %v1279_v44  ;;  %v1291_v52 = vld [vmem:[#allocation2 + $0x21] sm:$0xff]  ;;  %v546_v13 = vstv %s839_s27  ;;  %s840_s27 = sld [smem:[#allocation8 + $0x18]] }
  0xcd   : > { %v316_v30 = vmul.f32 %v314_v25, %v1254_v28  ;;  %v1261_v32 = vld [vmem:[#allocation2 + $0x2] sm:$0xff]  ;;  %v330_v34 = vmul.f32 %v328_v29, %v1254_v28  ;;  %v1267_v36 = vld [vmem:[#allocation2 + $0xa] sm:$0xff]  ;;  %v403_v50 = vmul.f32 %v401_v45, %v1279_v44  ;;  %v425_v54 = vmul.f32 %v423_v49, %v1291_v52  ;;  %v1297_v56 = vld [vmem:[#allocation2 + $0x1a] sm:$0xff] }
  0xce   : > { %285 = vrot.lane.b32.xlu1 %v280_v22, %s1047_s21  ;;  %297 = vrot.lane.b32.xlu0 %v293_v23, %s1048_s4  ;;  %v351_v35 = vmul.f32 %v350_v33, %v1261_v32  ;;  %v352_v40 = vmul.f32 %v350_v33, %v1267_v36  ;;  %v365_v41 = vmul.f32 %v364_v37, %v1261_v32  ;;  %v1303_v60 = vld [vmem:[#allocation2 + $0x22] sm:$0xff]  ;;  %v568_v18 = vstv %s841_s24  ;;  %s843_s24 = sld [smem:[#allocation8 + $0x1b]] }
  0xcf   : > { %v366_v43 = vmul.f32 %v364_v37, %v1267_v36  ;;  %v439_v58 = vmul.f32 %v437_v53, %v1291_v52  ;;  %v460_v59 = vmul.f32 %v459_v57, %v1297_v56  ;;  %v1307_v62 = vld [vmem:[#allocation2 + $0x30] sm:$0xff]  ;;  %v461_v0 = vmul.f32 %v459_v57, %v1303_v60  ;;  %v1314_v3 = vld [vmem:[#allocation2 + $0x38] sm:$0xff] }
  0xd0   : > { %v474_v1 = vmul.f32 %v473_v61, %v1297_v56  ;;  %v497_v2 = vmul.f32 %v496_v63, %v1307_v62  ;;  %v475_v5 = vmul.f32 %v473_v61, %v1303_v60  ;;  %v498_v6 = vmul.f32 %v496_v63, %v1314_v3  ;;  %v1321_v8 = vld [vmem:[#allocation2 + $0x31] sm:$0xff]  ;;  %v1327_v12 = vld [vmem:[#allocation2 + $0x39] sm:$0xff] }
  0xd1   : > { %v511_v7 = vmul.f32 %v510_v4, %v1307_v62  ;;  %v512_v10 = vmul.f32 %v510_v4, %v1314_v3  ;;  %v533_v11 = vmul.f32 %v532_v9, %v1321_v8  ;;  %v534_v15 = vmul.f32 %v532_v9, %v1327_v12  ;;  %v1333_v17 = vld [vmem:[#allocation2 + $0x32] sm:$0xff]  ;;  %v1339_v22 = vld [vmem:[#allocation2 + $0x3a] sm:$0xff] }
  0xd2   : > { %299 = vrot.lane.b32.xlu1 %v294_v26, %s1048_s4  ;;  %319 = vrot.lane.b32.xlu0 %v315_v27, %s1047_s21  ;;  %v547_v16 = vmul.f32 %v546_v13, %v1321_v8  ;;  %v548_v20 = vmul.f32 %v546_v13, %v1327_v12  ;;  %v569_v21 = vmul.f32 %v568_v18, %v1333_v17  ;;  %v582_v23 = vstv %s842_s6  ;;  %s846_s6 = sld [smem:[#allocation8 + $0x1e]] }
  0xd3   : > { %v1343_v25 = vld [vmem:[#allocation2 + $0x48] sm:$0xff]  ;;  %v605_v26 = vstv %s844_s12  ;;  %v570_v27 = vmul.f32 %v568_v18, %v1339_v22  ;;  %v583_v29 = vmul.f32 %v582_v23, %v1333_v17  ;;  %v619_v33 = vstv %s845_s20  ;;  %s849_s12 = sld [smem:[#allocation8 + $0x21]]  ;;  %s816_s20 = sshll.u32 %s1202_s18, 4 }
  0xd4   : > { %v620_v37 = vmul.f32 %v619_v33, %v1343_v25  ;;  %v1357_v39 = vld [vmem:[#allocation2 + $0x49] sm:$0xff]  ;;  %v655_v45 = vstv %s848_s7  ;;  %v272_v61 = vstv %s271_s9 }
  0xd5   : > { %v1369_v49 = vld [vmem:[#allocation2 + $0x4a] sm:$0xff]  ;;  %v273_v63 = vmul.f32 %v272_v61, %v1232_v14  ;;  %v274_v4 = vmul.f32 %v272_v61, %v1241_v19 }
  0xd6   : > { %321 = vrot.lane.b32.xlu1 %v316_v30, %s1047_s21  ;;  %333 = vrot.lane.b32.xlu0 %v329_v31, %s1048_s4  ;;  %v606_v30 = vmul.f32 %v605_v26, %v1343_v25  ;;  %v1350_v31 = vld [vmem:[#allocation2 + $0x50] sm:$0xff] }
  0xda   : > { %335 = vrot.lane.b32.xlu1 %v330_v34, %s1048_s4  ;;  %355 = vrot.lane.b32.xlu0 %v351_v35, %s1047_s21  ;;  %v584_v34 = vmul.f32 %v582_v23, %v1339_v22  ;;  %v607_v35 = vmul.f32 %v605_v26, %v1350_v31  ;;  %v344_v23 = vstv %s822_s13 }
  0xde   : > { %357 = vrot.lane.b32.xlu1 %v352_v40, %s1047_s21  ;;  %369 = vrot.lane.b32.xlu0 %v365_v41, %s1048_s4  ;;  %v641_v40 = vstv %s847_s30  ;;  %v621_v41 = vmul.f32 %v619_v33, %v1350_v31  ;;  %v345_v33 = vmul.f32 %v344_v23, %v1261_v32  ;;  %s203_s30 = scalar_lea.vmem [#allocation9], %s816_s20 }
  0xdf   : > { %s721_s7 = sshll.u32 %s203_s30, 4  ;;  %s1411_s7 = int_to_ptr.vmem [resolvable:$true] %s721_s7 }
  0xe0   : > { %s969_s13 = scalar_lea.vmem %s1411_s7, 256 }
  0xe1   : > { %p970_p5 = scmp.ne.s32.totalorder %s1411_s7, %s969_s13 }
  0xe2   : > { %371 = vrot.lane.b32.xlu1 %v366_v43, %s1048_s4  ;;  %392 = vrot.lane.b32.xlu0 %v388_v42, %s1047_s21  ;;  %v642_v42 = vmul.f32 %v641_v40, %v1357_v39  ;;  %v1363_v43 = vld [vmem:[#allocation2 + $0x51] sm:$0xff] }
  0xe3   : > { %p971_p8 = pnand %p970_p5, %p1477_p12 }
  0xe5   : > { %p972_p9 = pneg %p971_p8 }
  0xe6   : > { %394 = vrot.lane.b32.xlu1 %v389_v46, %s1047_s21  ;;  %406 = vrot.lane.b32.xlu0 %v402_v47, %s1048_s4  ;;  %v643_v46 = vmul.f32 %v641_v40, %v1363_v43  ;;  %v656_v47 = vmul.f32 %v655_v45, %v1357_v39 }
  0xea   : > { %408 = vrot.lane.b32.xlu1 %v403_v50, %s1048_s4  ;;  %428 = vrot.lane.b32.xlu0 %v424_v51, %s1047_s21  ;;  %v677_v50 = vstv %s850_s5  ;;  %v657_v51 = vmul.f32 %v655_v45, %v1363_v43  ;;  %s858_s5 = sshll.u32 %s1096_s2, 8  ;;  %s1049_s2 = smov [#allocation9]  }
  0xeb   : > { %v678_v53 = vmul.f32 %v677_v50, %v1369_v49 }
  0xee   : > { %430 = vrot.lane.b32.xlu1 %v425_v54, %s1047_s21  ;;  %442 = vrot.lane.b32.xlu0 %v438_v55, %s1048_s4  ;;  %v1375_v54 = vld [vmem:[#allocation2 + $0x52] sm:$0xff]  ;;  %v691_v55 = vstv %s851_s8 }
  0xef   : > { %v679_v57 = vmul.f32 %v677_v50, %v1375_v54 }
  0xf2   : > { %444 = vrot.lane.b32.xlu1 %v439_v58, %s1048_s4  ;;  %464 = vrot.lane.b32.xlu0 %v460_v59, %s1047_s21  ;;  %v692_v58 = vmul.f32 %v691_v55, %v1369_v49  ;;  %v693_v59 = vmul.f32 %v691_v55, %v1375_v54 }
  0xf6   : > { %466 = vrot.lane.b32.xlu1 %v461_v0, %s1047_s21  ;;  %478 = vrot.lane.b32.xlu0 %v474_v1, %s1048_s4  ;;  %v268_v0 = vstv %s267_s10  ;;  %s1416_s10 = scalar_lea.hbm %s1463_s3, %s858_s5 }
  0xfa   : > { %480 = vrot.lane.b32.xlu1 %v475_v5, %s1048_s4  ;;  %501 = vrot.lane.b32.xlu0 %v497_v2, %s1047_s21  ;;  %v275_v2 = vadd.f32 %v273_v63, %v268_v0  ;;  %v308_v5 = vstv %s819_s11  ;;  %s708_s11 = scalar_lea.sflag [#allocation6], %s1202_s18 }
  0xfb   : > { %v309_v13 = vmul.f32 %v308_v5, %v1247_v24  ;;  %v310_v14 = vmul.f32 %v308_v5, %v1254_v28 }
  0xfe   : > { %503 = vrot.lane.b32.xlu1 %v498_v6, %s1047_s21  ;;  %515 = vrot.lane.b32.xlu0 %v511_v7, %s1048_s4 }
 0x102   : > { %517 = vrot.lane.b32.xlu1 %v512_v10, %s1048_s4  ;;  %537 = vrot.lane.b32.xlu0 %v533_v11, %s1047_s21  ;;  %v276_v10 = vadd.f32 %v274_v4, %v268_v0 }
 0x106   : > { %539 = vrot.lane.b32.xlu1 %v534_v15, %s1047_s21  ;;  %551 = vrot.lane.b32.xlu0 %v547_v16, %s1048_s4 }
 0x10a   : > { %553 = vrot.lane.b32.xlu1 %v548_v20, %s1048_s4  ;;  %573 = vrot.lane.b32.xlu0 %v569_v21, %s1047_s21 }
 0x10e   : > { %575 = vrot.lane.b32.xlu1 %v570_v27, %s1047_s21  ;;  %587 = vrot.lane.b32.xlu0 %v583_v29, %s1048_s4 }
 0x112   : > { %589 = vrot.lane.b32.xlu1 %v584_v34, %s1048_s4  ;;  %610 = vrot.lane.b32.xlu0 %v606_v30, %s1047_s21 }
 0x116   : > { %612 = vrot.lane.b32.xlu1 %v607_v35, %s1047_s21  ;;  %624 = vrot.lane.b32.xlu0 %v620_v37, %s1048_s4 }
 0x11a   : > { %626 = vrot.lane.b32.xlu1 %v621_v41, %s1048_s4  ;;  %646 = vrot.lane.b32.xlu0 %v642_v42, %s1047_s21  ;;  %v346_v41 = vmul.f32 %v344_v23, %v1267_v36 }
 0x11e   : > { %648 = vrot.lane.b32.xlu1 %v643_v46, %s1047_s21  ;;  %660 = vrot.lane.b32.xlu0 %v656_v47, %s1048_s4 }
 0x122   : > { %662 = vrot.lane.b32.xlu1 %v657_v51, %s1048_s4  ;;  %682 = vrot.lane.b32.xlu0 %v678_v53, %s1047_s21 }
 0x126   : > { %684 = vrot.lane.b32.xlu1 %v679_v57, %s1047_s21  ;;  %696 = vrot.lane.b32.xlu0 %v692_v58, %s1048_s4  ;;  %s825_s21 = sld [smem:[#allocation8 + $0x9]] }
 0x12a   : > { %698 = vrot.lane.b32.xlu1 %v693_v59, %s1048_s4  ;;  %s828_s4 = sld [smem:[#allocation8 + $0xc]] }
 0x12c   : > { %v381_v42 = vstv %s825_s21  ;;  %s973_s21 = sshll.u32 %s1049_s2, 4  ;;  %s974_s21 = int_to_ptr.vmem [resolvable:$false] %s973_s21 }
 0x12d   : > { %v382_v51 = vmul.f32 %v381_v42, %v1271_v38  ;;  %v383_v59 = vmul.f32 %v381_v42, %v1279_v44  ;;  %p976_p10 = scmp.lt.s32.totalorder %s1411_s7, %s974_s21 }
 0x130   : > { %v417_v61 = vstv %s828_s4  ;;  %s975_s4 = scalar_lea.vmem %s974_s21, 512 }
 0x131   : > { %v418_v4 = vmul.f32 %v417_v61, %v1285_v48  ;;  %p977_p1 = scmp.lt.s32.totalorder %s975_s4, %s969_s13 }
 0x133   : > { %p978_p4 = por %p977_p1, %p976_p10 }
 0x135   : > { %p979_p11 = pnand %p978_p4, %p972_p9 }
 0x13c   : > { %v284_v1 = vpop.permute.xlu0 %283 }
 0x13d   : > { %v289_v6 = vadd.f32 %v284_v1, %v275_v2 }
 0x140   : > { %v286_v7 = vpop.permute.xlu1 %285  ;;  %v298_v9 = vpop.permute.xlu0 %297 }
 0x141   : > { %v303_v11 = vadd.f32 %v298_v9, %v289_v6  ;;  %v290_v15 = vadd.f32 %v286_v7, %v276_v10  ;;  %v419_v10 = vmul.f32 %v417_v61, %v1291_v52 }
 0x143   : > { %v311_v16 = vadd.f32 %v309_v13, %v303_v11  ;;  %v453_v11 = vstv %s831_s23 }
 0x144   : > { %v300_v18 = vpop.permute.xlu1 %299  ;;  %v320_v20 = vpop.permute.xlu0 %319 }
 0x145   : > { %v304_v21 = vadd.f32 %v300_v18, %v290_v15  ;;  %v325_v26 = vadd.f32 %v320_v20, %v311_v16  ;;  %v454_v20 = vmul.f32 %v453_v11, %v1297_v56 }
 0x147   : > { %v312_v19 = vadd.f32 %v310_v14, %v304_v21 }
 0x148   : > { %v322_v27 = vpop.permute.xlu1 %321  ;;  %v334_v29 = vpop.permute.xlu0 %333 }
 0x149   : > { %v339_v30 = vadd.f32 %v334_v29, %v325_v26  ;;  %v326_v34 = vadd.f32 %v322_v27, %v312_v19  ;;  %v455_v19 = vmul.f32 %v453_v11, %v1303_v60  ;;  %v490_v27 = vstv %s834_s28 }
 0x14a   : > { %v492_v42 = vmul.f32 %v490_v27, %v1314_v3 }
 0x14b   : > { %v347_v35 = vadd.f32 %v345_v33, %v339_v30 }
 0x14c   : > { %v336_v37 = vpop.permute.xlu1 %335  ;;  %v356_v24 = vpop.permute.xlu0 %355 }
 0x14d   : > { %v340_v40 = vadd.f32 %v336_v37, %v326_v34  ;;  %v361_v45 = vadd.f32 %v356_v24, %v347_v35  ;;  %v491_v35 = vmul.f32 %v490_v27, %v1307_v62 }
 0x14f   : > { %v348_v28 = vadd.f32 %v346_v41, %v340_v40 }
 0x150   : > { %v358_v46 = vpop.permute.xlu1 %357  ;;  %v370_v47 = vpop.permute.xlu0 %369 }
 0x151   : > { %v375_v50 = vadd.f32 %v370_v47, %v361_v45  ;;  %v362_v53 = vadd.f32 %v358_v46, %v348_v28  ;;  %v526_v45 = vstv %s837_s29 }
 0x153   : > { %v384_v55 = vadd.f32 %v382_v51, %v375_v50  ;;  %v527_v51 = vmul.f32 %v526_v45, %v1321_v8 }
 0x154   : > { %v372_v57 = vpop.permute.xlu1 %371  ;;  %v393_v32 = vpop.permute.xlu0 %392 }
 0x155   : > { %v376_v58 = vadd.f32 %v372_v57, %v362_v53  ;;  %v398_v63 = vadd.f32 %v393_v32, %v384_v55 }
 0x157   : > { %v385_v36 = vadd.f32 %v383_v59, %v376_v58  ;;  %v528_v58 = vmul.f32 %v526_v45, %v1327_v12  ;;  %v562_v59 = vstv %s840_s27 }
 0x158   : > { %v395_v0 = vpop.permute.xlu1 %394  ;;  %v407_v1 = vpop.permute.xlu0 %406 }
 0x159   : > { %v412_v2 = vadd.f32 %v407_v1, %v398_v63  ;;  %v399_v5 = vadd.f32 %v395_v0, %v385_v36  ;;  %v563_v1 = vmul.f32 %v562_v59, %v1333_v17 }
 0x15b   : > { %v420_v6 = vadd.f32 %v418_v4, %v412_v2 }
 0x15c   : > { %v409_v7 = vpop.permute.xlu1 %408  ;;  %v429_v38 = vpop.permute.xlu0 %428 }
 0x15d   : > { %v413_v9 = vadd.f32 %v409_v7, %v399_v5  ;;  %v434_v13 = vadd.f32 %v429_v38, %v420_v6  ;;  %v564_v7 = vmul.f32 %v562_v59, %v1339_v22  ;;  %v599_v38 = vstv %s843_s24 }
 0x15f   : > { %v421_v44 = vadd.f32 %v419_v10, %v413_v9 }
 0x160   : > { %v431_v15 = vpop.permute.xlu1 %430  ;;  %v443_v16 = vpop.permute.xlu0 %442 }
 0x161   : > { %v448_v18 = vadd.f32 %v443_v16, %v434_v13  ;;  %v435_v21 = vadd.f32 %v431_v15, %v421_v44  ;;  %v600_v44 = vmul.f32 %v599_v38, %v1343_v25 }
 0x163   : > { %v456_v14 = vadd.f32 %v454_v20, %v448_v18 }
 0x164   : > { %v445_v23 = vpop.permute.xlu1 %444  ;;  %v465_v48 = vpop.permute.xlu0 %464 }
 0x165   : > { %v449_v26 = vadd.f32 %v445_v23, %v435_v21  ;;  %v470_v29 = vadd.f32 %v465_v48, %v456_v14  ;;  %v601_v21 = vmul.f32 %v599_v38, %v1350_v31  ;;  %v635_v14 = vstv %s846_s6 }
 0x166   : > { %v636_v27 = vmul.f32 %v635_v14, %v1357_v39 }
 0x167   : > { %v457_v52 = vadd.f32 %v455_v19, %v449_v26 }
 0x168   : > { %v467_v30 = vpop.permute.xlu1 %466  ;;  %v479_v33 = vpop.permute.xlu0 %478 }
 0x169   : > { %v484_v34 = vadd.f32 %v479_v33, %v470_v29  ;;  %v471_v37 = vadd.f32 %v467_v30, %v457_v52 }
 0x16b   : > { %v493_v24 = vadd.f32 %v491_v35, %v484_v34  ;;  %v637_v34 = vmul.f32 %v635_v14, %v1363_v43  ;;  %v671_v35 = vstv %s849_s12 }
 0x16c   : > { %v481_v40 = vpop.permute.xlu1 %480  ;;  %v502_v56 = vpop.permute.xlu0 %501 }
 0x16d   : > { %v485_v41 = vadd.f32 %v481_v40, %v471_v37  ;;  %v507_v28 = vadd.f32 %v502_v56, %v493_v24 }
 0x16f   : > { %v494_v60 = vadd.f32 %v492_v42, %v485_v41  ;;  %v672_v41 = vmul.f32 %v671_v35, %v1369_v49 }
 0x170   : > { %v504_v46 = vpop.permute.xlu1 %503  ;;  %v516_v47 = vpop.permute.xlu0 %515 }
 0x171   : > { %v521_v50 = vadd.f32 %v516_v47, %v507_v28  ;;  %v508_v53 = vadd.f32 %v504_v46, %v494_v60  ;;  %v673_v46 = vmul.f32 %v671_v35, %v1375_v54 }
 0x173   : > { %v529_v55 = vadd.f32 %v527_v51, %v521_v50 }
 0x174   : > { %v518_v57 = vpop.permute.xlu1 %517  ;;  %v538_v62 = vpop.permute.xlu0 %537 }
 0x175   : > { %v522_v32 = vadd.f32 %v518_v57, %v508_v53  ;;  %v543_v61 = vadd.f32 %v538_v62, %v529_v55 }
 0x177   : > { %v530_v3 = vadd.f32 %v528_v58, %v522_v32 }
 0x178   : > { %v540_v63 = vpop.permute.xlu1 %539  ;;  %v552_v36 = vpop.permute.xlu0 %551 }
 0x179   : > { %v557_v0 = vadd.f32 %v552_v36, %v543_v61  ;;  %v544_v2 = vadd.f32 %v540_v63, %v530_v3 }
 0x17b   : > { %v565_v4 = vadd.f32 %v563_v1, %v557_v0 }
 0x17c   : > { %v554_v5 = vpop.permute.xlu1 %553  ;;  %v574_v8 = vpop.permute.xlu0 %573 }
 0x17d   : > { %v558_v6 = vadd.f32 %v554_v5, %v544_v2  ;;  %v579_v9 = vadd.f32 %v574_v8, %v565_v4 }
 0x17f   : > { %v566_v12 = vadd.f32 %v564_v7, %v558_v6 }
 0x180   : > { %v576_v10 = vpop.permute.xlu1 %575  ;;  %v588_v11 = vpop.permute.xlu0 %587 }
 0x181   : > { %v593_v13 = vadd.f32 %v588_v11, %v579_v9  ;;  %v580_v15 = vadd.f32 %v576_v10, %v566_v12 }
 0x183   : > { %v602_v16 = vadd.f32 %v600_v44, %v593_v13 }
 0x184   : > { %v590_v18 = vpop.permute.xlu1 %589  ;;  %v611_v17 = vpop.permute.xlu0 %610 }
 0x185   : > { %v594_v20 = vadd.f32 %v590_v18, %v580_v15  ;;  %v616_v23 = vadd.f32 %v611_v17, %v602_v16 }
 0x187   : > { %v603_v22 = vadd.f32 %v601_v21, %v594_v20 }
 0x188   : > { %v613_v48 = vpop.permute.xlu1 %612  ;;  %v625_v26 = vpop.permute.xlu0 %624 }
 0x189   : > { %v630_v19 = vadd.f32 %v625_v26, %v616_v23  ;;  %v617_v29 = vadd.f32 %v613_v48, %v603_v22 }
 0x18b   : > { %v638_v52 = vadd.f32 %v636_v27, %v630_v19 }
 0x18c   : > { %v627_v25 = vpop.permute.xlu1 %626  ;;  %v647_v30 = vpop.permute.xlu0 %646 }
 0x18d   : > { %v631_v33 = vadd.f32 %v627_v25, %v617_v29  ;;  %v652_v37 = vadd.f32 %v647_v30, %v638_v52 }
 0x18f   : > { %v639_v31 = vadd.f32 %v637_v34, %v631_v33 }
 0x190   : > { %v649_v24 = vpop.permute.xlu1 %648  ;;  %v661_v40 = vpop.permute.xlu0 %660 }
 0x191   : > { %v666_v56 = vadd.f32 %v661_v40, %v652_v37  ;;  %v653_v42 = vadd.f32 %v649_v24, %v639_v31 }
 0x193   : > { %v674_v45 = vadd.f32 %v672_v41, %v666_v56 }
 0x194   : > { %v663_v39 = vpop.permute.xlu1 %662  ;;  %v683_v28 = vpop.permute.xlu0 %682 }
 0x195   : > { %v667_v60 = vadd.f32 %v663_v39, %v653_v42  ;;  %v688_v47 = vadd.f32 %v683_v28, %v674_v45 }
 0x197   : > { %v675_v43 = vadd.f32 %v673_v46, %v667_v60 }
 0x198   : > { %v685_v50 = vpop.permute.xlu1 %684  ;;  %v697_v51 = vpop.permute.xlu0 %696 }
 0x199   : > { %v702_v53 = vadd.f32 %v697_v51, %v688_v47  ;;  %v689_v49 = vadd.f32 %v685_v50, %v675_v43 }
 0x19b   : > { %705 = vst.msk [vmem:[%s203_s30] sm:$0xff] %vm704_vm3, %v702_v53 }
 0x19c   : > { %v699_v55 = vpop.permute.xlu1 %698 }
 0x19d   : > { %v703_v54 = vadd.f32 %v699_v55, %v689_v49 }
 0x19f   : > { %706 = vst.msk [vmem:[%s203_s30 + $0x8] sm:$0xff] %vm704_vm3, %v703_v54 }
 0x1a0   : > { %982 = shalt.err (!%p979_p11)
}
 0x1a1   : > { %s983_s23 = scalar_lea.hbm %s1416_s10, 256  ;;  %s987_s27 = scalar_lea.hbm %s1463_s3, 512 }
 0x1a2   : > { %p984_p0 = scmp.ne.s32.totalorder %s1416_s10, %s983_s23  ;;  %p988_p6 = scmp.lt.u32.totalorder %s1416_s10, %s1463_s3 }
 0x1a3   : > { %p989_p3 = scmp.lt.u32.totalorder %s987_s27, %s983_s23  ;;  %p991_p5 = scmp.lt.u32.totalorder %s983_s23, %s1416_s10 }
 0x1a4   : > { %p985_p2 = pnand %p984_p0, %p1477_p12 }
 0x1a5   : > { %p990_p13 = por %p989_p3, %p988_p6 }
 0x1a6   : > { %p986_p7 = pneg %p985_p2 }
 0x1a7   : > { %p992_p8 = por %p991_p5, %p990_p13 }
 0x1a9   : > { %p993_p9 = pnand %p992_p8, %p986_p7 }
 0x1ab   : > { %996 = shalt.err (!%p993_p9)
}
 0x1ac   : > { %s1050_s12 = smov 128   ;;  %s1051_s20 = smov 8  }
 0x1ad   : > { %865 = dma.vmem_to_hbm [thread:$0]  (%p1477_p12), %s1411_s7, 256, %s1416_s10, %s708_s11, %s1050_s12, %s1050_s12, %s1051_s20  }
 0x1ae PF: > { %s736_s30 = sand.u32 1, %s1027_s14   ;;  %p1478_p10 = scmp.ne.s32.totalorder %s1470_s26, 0 }
 0x1af   : > { %p1479_p1 = scmp.ge.s32.totalorder %s1039_s17, 2  ;;  %s737_s5 = scalar_lea.sflag [#allocation6], %s736_s30 }
 0x1b1   : > { %p876_p4 = pnand %p1479_p1, %p1478_p10 }
 0x1b3   : > { %1022 = dma.done.wait (!%p876_p4), %s737_s5, 256  }
 0x1b4   : > { %1024 = vsyncadd (!%p876_p4), %s737_s5, 4294967040  ;;  %p18_p11 = scmp.ge.s32.totalorder %s1100_s19, 4   ;;  %s1480_s14 = smov %s1031_s15 }
 0x1b5   : > { %s1481_s15 = smov %s1035_s16  ;;  %s1482_s16 = smov %s1112_s22 }
 0x1b6   : > { %s1483_s17 = smov %s1100_s19  ;;  %20 = sbr.rel (!%p18_p11) target bundleno = 8 (0x8), region = 85 }
 0x1bd   :  { %742 = vsyncpa [#allocation5], 1 }
 0x1be   :  { %744 = vsyncpa [#allocation5 + $0x1], 1 }
 0x1bf   :  { %745 = vsyncpa [#allocation6], 1 }
 0x1c0   :  { %747 = vsyncpa [#allocation6 + $0x1], 1 }
 0x1c1   :  { %748 = vsyncpa [#allocation7], 1 }
 0x1c2   :  { %750 = vsyncpa [#allocation7 + $0x1], 1 }

</bundles_post_ra>
